<compile_context>
chip_gen: v6e
topology: v6e:2x2x1
jax: 0.10.0
libtpu: 0.0.40
codegen_flags: <defaults>
</compile_context>

<pallas_src>
import math

import jax
import jax.numpy as jnp
from jax.experimental import pallas as pl
from jax.experimental.pallas import tpu as pltpu


def _matching_attention_kernel(m_ref, x_ref, w_ref, pool_ref, alpha_ref):
    # m_ref    : (tb, seq, mem)  bf16   memories, channels-last (mem lane-dense)
    # x_ref    : (tb, cand)      bf16   candidate vectors
    # w_ref    : (cand, mem)     bf16   transform weight (pre-transposed, bias=False)
    # pool_ref : (tb, mem)       f32    attention-pooled memory (dense store)
    # alpha_ref: (tb, seq)       f32    attention weights (seq in the lane dim)

    # ---- candidate projection: transform(x) = x @ W  (att_type='general', no bias) ----
    # bf16 operands on the MXU, f32 accumulation.
    x_t = jnp.dot(x_ref[...], w_ref[...],
                  preferred_element_type=jnp.float32)                    # (tb, mem) f32

    # ---- scores[b, s] = <x_t[b], M[b, s]>  (== bmm(x_.unsqueeze(1), M.permute(1,2,0))) ----
    # One query row per batch element -> VPU multiply + lane reduction over mem.
    # M is cast to f32 inline (not held live across the body).
    scores = jnp.sum(x_t[:, None, :] * m_ref[...].astype(jnp.float32),
                     axis=-1)                                            # (tb, seq) f32

    # ---- softmax over the sequence axis (torch dim=2), lane-dense, all in f32 ----
    s_max = jnp.max(scores, axis=-1, keepdims=True)                      # (tb, 1)
    e = jnp.exp(scores - s_max)                                          # (tb, seq)
    denom = jnp.sum(e, axis=-1, keepdims=True)                           # (tb, 1)
    alpha = e / denom                                                    # exact normalization
    alpha_ref[...] = alpha                                               # (tb, seq) f32

    # ---- attn_pool[b] = sum_s alpha[b, s] * M[b, s]  (== bmm(alpha, M.transpose(0,1))) ----
    pool_ref[...] = jnp.sum(alpha[:, :, None] * m_ref[...].astype(jnp.float32),
                            axis=1)                                      # (tb, mem) f32


def _choose_batch_tile(batch_padded, seq_len, mem_dim, cand_dim):
    """Largest multiple-of-8 batch tile whose buffers fit a conservative VMEM budget
    (sized for v7x's 32 MiB scoped default), while keeping the grid >= 2 steps when
    the batch allows (pipelining + v7x dual-TC sharding)."""
    per_row_bytes = (
        2 * seq_len * mem_dim * 2      # M tile, bf16, double-buffered
        + 2 * cand_dim * 2             # x tile, bf16, double-buffered
        + 2 * mem_dim * 4              # pool output, f32, double-buffered
        + 2 * seq_len * 4              # alpha output, f32, double-buffered
        + 2 * seq_len * mem_dim * 4    # in-kernel f32 intermediates (scores / pool passes)
        + 4 * mem_dim * 4              # x_t / misc f32
    )
    budget = 24 * 1024 * 1024          # safe inside v7x's 32 MiB scoped-VMEM default
    tb = max(8, (budget // per_row_bytes) // 8 * 8)
    tb = min(tb, batch_padded)
    # keep at least 2 grid steps when batch allows
    if tb >= batch_padded and batch_padded > 8:
        tb = max(8, (batch_padded // 2) // 8 * 8)
    # tb must divide the padded batch
    while batch_padded % tb != 0:
        tb -= 8
    return max(tb, 8), per_row_bytes


def matching_attention_forward(M, x, w_t, *, interpret=False):
    """Pallas wrapper for MatchingAttention.forward (att_type='general', mask=None).

    M   : (seq_len, batch, mem_dim) f32  -- memories (original torch layout)
    x   : (batch, cand_dim)         f32  -- candidate
    w_t : (cand_dim, mem_dim)       f32  -- nn.Linear(cand, mem, bias=False) weight,
                                            stored pre-transposed so the kernel does x @ W.
    returns (attn_pool (batch, mem_dim), alpha (batch, 1, seq_len)), both f32.
    """
    seq_len, batch, mem_dim = M.shape
    cand_dim = x.shape[-1]

    # Wrapper-side layout plumbing: channels-last, lane-dense memories; bf16 MXU/DMA operands.
    m_bls = jnp.transpose(M, (1, 0, 2)).astype(jnp.bfloat16)        # (batch, seq, mem)
    x_b = x.astype(jnp.bfloat16)                                    # (batch, cand)
    w_b = w_t.astype(jnp.bfloat16)                                  # (cand, mem)

    # Pad the batch to a multiple of 8 sublanes (padded rows are zero; independent per row).
    batch_padded = ((batch + 7) // 8) * 8
    if batch_padded != batch:
        pad = batch_padded - batch
        m_bls = jnp.pad(m_bls, ((0, pad), (0, 0), (0, 0)))
        x_b = jnp.pad(x_b, ((0, pad), (0, 0)))

    tb, per_row_bytes = _choose_batch_tile(batch_padded, seq_len, mem_dim, cand_dim)
    grid = (batch_padded // tb,)

    # VMEM budget from the actual tiles (includes the resident, double-buffered weight).
    weight_bytes = 2 * cand_dim * mem_dim * 2
    tile_bytes = tb * per_row_bytes + weight_bytes
    vmem_limit = int(min(max(2 * tile_bytes, 8 * 1024 * 1024), 30 * 1024 * 1024))

    cost = pl.CostEstimate(
        flops=(2 * batch_padded * cand_dim * mem_dim          # projection
               + 4 * batch_padded * seq_len * mem_dim         # scores + pooling
               + 4 * batch_padded * seq_len),                 # softmax elementwise
        transcendentals=batch_padded * seq_len,
        bytes_accessed=(m_bls.size * 2 + x_b.size * 2 + w_b.size * 2
                        + batch_padded * mem_dim * 4 + batch_padded * seq_len * 4),
    )

    pool2, alpha2 = pl.pallas_call(
        _matching_attention_kernel,
        out_shape=(
            jax.ShapeDtypeStruct((batch_padded, mem_dim), jnp.float32),
            jax.ShapeDtypeStruct((batch_padded, seq_len), jnp.float32),
        ),
        grid=grid,
        in_specs=[
            pl.BlockSpec((tb, seq_len, mem_dim), lambda i: (i, 0, 0)),   # M tile (streamed)
            pl.BlockSpec((tb, cand_dim), lambda i: (i, 0)),              # x tile
            pl.BlockSpec((cand_dim, mem_dim), lambda i: (0, 0)),         # weight (resident)
        ],
        out_specs=(
            pl.BlockSpec((tb, mem_dim), lambda i: (i, 0)),               # dense pool store
            pl.BlockSpec((tb, seq_len), lambda i: (i, 0)),               # lane-dense alpha
        ),
        compiler_params=pltpu.CompilerParams(
            dimension_semantics=("parallel",),
            vmem_limit_bytes=vmem_limit,
        ),
        cost_estimate=cost,
        interpret=interpret,
    )(m_bls, x_b, w_b)

    attn_pool = pool2[:batch, :]                              # (batch, mem_dim)
    alpha = alpha2[:batch, :].reshape(batch, 1, seq_len)      # torch's (batch, 1, seq_len)
    return attn_pool, alpha


def matching_attention_ref(M, x, w_t):
    """Pure-JAX (f32) transcription of MatchingAttention.forward, att_type='general'."""
    M_ = jnp.transpose(M, (1, 2, 0))                          # (batch, mem, seq)
    x_ = (x @ w_t)[:, None, :]                                # (batch, 1, mem)
    alpha = jax.nn.softmax(jnp.matmul(x_, M_), axis=2)        # (batch, 1, seq)
    attn_pool = jnp.matmul(alpha, jnp.transpose(M, (1, 0, 2)))[:, 0, :]   # (batch, mem)
    return attn_pool, alpha


if __name__ == "__main__":
    # Small shapes consistent with the module (seq_len x batch x mem_dim memories).
    seq_len, batch = 8, 16
    mem_dim, cand_dim = 128, 64

    key = jax.random.PRNGKey(0)
    k_m, k_x, k_w = jax.random.split(key, 3)

    # LSTM-hidden-like scale for memories / candidate.
    M = 0.5 * jax.random.normal(k_m, (seq_len, batch, mem_dim), jnp.float32)
    x = 0.5 * jax.random.normal(k_x, (batch, cand_dim), jnp.float32)

    # nn.Linear(cand_dim, mem_dim, bias=False) weight (uniform +-1/sqrt(in)), pre-transposed.
    bound = 1.0 / math.sqrt(cand_dim)
    w_t = jax.random.uniform(k_w, (cand_dim, mem_dim), jnp.float32, -bound, bound)

    attn_pool, alpha = matching_attention_forward(M, x, w_t)
    attn_pool = jax.block_until_ready(attn_pool)
    alpha = jax.block_until_ready(alpha)

    pool_ref, alpha_ref = matching_attention_ref(M, x, w_t)

    assert attn_pool.shape == (batch, mem_dim)
    assert alpha.shape == (batch, 1, seq_len)
    # bf16 MXU/DMA operands vs an all-f32 reference => relaxed tolerance.
    assert jnp.allclose(attn_pool, pool_ref, atol=3e-2, rtol=3e-2), \
        float(jnp.max(jnp.abs(attn_pool - pool_ref)))
    assert jnp.allclose(alpha, alpha_ref, atol=3e-2, rtol=3e-2), \
        float(jnp.max(jnp.abs(alpha - alpha_ref)))
    # Exact softmax normalization: each alpha row sums to 1.
    assert jnp.allclose(jnp.sum(alpha, axis=-1), 1.0, atol=1e-5)

    # TODO(synk): att_type 'dot' / 'general2' (masked + tanh + renormalize) / 'concat'
    # branches and non-default masks are not implemented; this kernel covers the module
    # default att_type='general' with mask=None (mask is identity on that path).
    print("KERNEL_OK")
</pallas_src>

<mosaic_0001>
module attributes {stable_mosaic.version = 11 : i64} {
  func.func @_matching_attention_kernel(%arg0: i32, %arg1: memref<8x8x128xbf16, #tpu.memory_space<vmem>>, %arg2: memref<8x64xbf16, #tpu.memory_space<vmem>>, %arg3: memref<64x128xbf16, #tpu.memory_space<vmem>>, %arg4: memref<8x128xf32, #tpu.memory_space<vmem>>, %arg5: memref<8x8xf32, #tpu.memory_space<vmem>>) attributes {dimension_semantics = [#tpu.dimension_semantics<parallel>], iteration_bounds = array<i64: 2>, scalar_prefetch = 0 : i64, scratch_operands = 0 : i64, tpu.core_type = #tpu.core_type<tc>, window_params = [{transform_indices = @transform_0, window_bounds = array<i64: 8, 8, 128>}, {transform_indices = @transform_1, window_bounds = array<i64: 8, 64>}, {pipeline_mode = #tpu.pipeline_mode<synchronous>, transform_indices = @transform_2, window_bounds = array<i64: 64, 128>}, {transform_indices = @transform_3, window_bounds = array<i64: 8, 128>}, {transform_indices = @transform_4, window_bounds = array<i64: 8, 8>}]} {
    %c0 = arith.constant 0 : index
    %c0_0 = arith.constant 0 : index
    %0 = vector.load %arg2[%c0, %c0_0] : memref<8x64xbf16, #tpu.memory_space<vmem>>, vector<8x64xbf16>
    %c0_1 = arith.constant 0 : index
    %c0_2 = arith.constant 0 : index
    %1 = vector.load %arg3[%c0_1, %c0_2] : memref<64x128xbf16, #tpu.memory_space<vmem>>, vector<64x128xbf16>
    %cst = arith.constant dense<0.000000e+00> : vector<8x128xf32>
    %2 = tpu.matmul %0, %1, %cst {dimension_numbers = #tpu.dot_dimension_numbers<[1], [0], [0], [1], [0, 0, 1, 1], [], []>} : vector<8x64xbf16>, vector<64x128xbf16>, vector<8x128xf32> -> vector<8x128xf32>
    %3 = vector.shape_cast %2 : vector<8x128xf32> to vector<8x1x128xf32>
    %c0_3 = arith.constant 0 : index
    %c0_4 = arith.constant 0 : index
    %c0_5 = arith.constant 0 : index
    %4 = vector.load %arg1[%c0_3, %c0_4, %c0_5] : memref<8x8x128xbf16, #tpu.memory_space<vmem>>, vector<8x8x128xbf16>
    %5 = arith.extf %4 : vector<8x8x128xbf16> to vector<8x8x128xf32>
    %6 = vector.broadcast %3 : vector<8x1x128xf32> to vector<8x8x128xf32>
    %7 = arith.mulf %6, %5 : vector<8x8x128xf32>
    %cst_6 = arith.constant dense<0.000000e+00> : vector<8x8xf32>
    %8 = vector.multi_reduction <add>, %7, %cst_6 [2] : vector<8x8x128xf32> to vector<8x8xf32>
    %cst_7 = arith.constant dense<0xFF800000> : vector<8xf32>
    %9 = vector.multi_reduction <maximumf>, %8, %cst_7 [1] : vector<8x8xf32> to vector<8xf32>
    %10 = vector.shape_cast %9 : vector<8xf32> to vector<8x1xf32>
    %11 = vector.broadcast %10 : vector<8x1xf32> to vector<8x8xf32>
    %12 = arith.subf %8, %11 : vector<8x8xf32>
    %13 = math.exp %12 : vector<8x8xf32>
    %cst_8 = arith.constant dense<0.000000e+00> : vector<8xf32>
    %14 = vector.multi_reduction <add>, %13, %cst_8 [1] : vector<8x8xf32> to vector<8xf32>
    %15 = vector.shape_cast %14 : vector<8xf32> to vector<8x1xf32>
    %16 = vector.broadcast %15 : vector<8x1xf32> to vector<8x8xf32>
    %17 = arith.divf %13, %16 : vector<8x8xf32>
    %c0_9 = arith.constant 0 : index
    %c0_10 = arith.constant 0 : index
    %18 = vector.load %arg5[%c0_9, %c0_10] : memref<8x8xf32, #tpu.memory_space<vmem>>, vector<8x8xf32>
    tpu.vector_store %arg5[%c0_9, %c0_10], %17 {strides = array<i32>} : memref<8x8xf32, #tpu.memory_space<vmem>>, vector<8x8xf32>,
    %19 = vector.shape_cast %17 : vector<8x8xf32> to vector<8x8x1xf32>
    %c0_11 = arith.constant 0 : index
    %c0_12 = arith.constant 0 : index
    %c0_13 = arith.constant 0 : index
    %20 = vector.load %arg1[%c0_11, %c0_12, %c0_13] : memref<8x8x128xbf16, #tpu.memory_space<vmem>>, vector<8x8x128xbf16>
    %21 = arith.extf %20 : vector<8x8x128xbf16> to vector<8x8x128xf32>
    %22 = vector.broadcast %19 : vector<8x8x1xf32> to vector<8x8x128xf32>
    %23 = arith.mulf %22, %21 : vector<8x8x128xf32>
    %cst_14 = arith.constant dense<0.000000e+00> : vector<8x128xf32>
    %24 = vector.multi_reduction <add>, %23, %cst_14 [1] : vector<8x8x128xf32> to vector<8x128xf32>
    %c0_15 = arith.constant 0 : index
    %c0_16 = arith.constant 0 : index
    %25 = vector.load %arg4[%c0_15, %c0_16] : memref<8x128xf32, #tpu.memory_space<vmem>>, vector<8x128xf32>
    tpu.vector_store %arg4[%c0_15, %c0_16], %24 {strides = array<i32>} : memref<8x128xf32, #tpu.memory_space<vmem>>, vector<8x128xf32>,
    return
  }
  func.func @transform_0(%arg0: i32) -> (i32, i32, i32) {
    %c0_i32 = arith.constant 0 : i32
    %c0_i32_0 = arith.constant 0 : i32
    %c0_i32_1 = arith.constant 0 : i32
    return %arg0, %c0_i32, %c0_i32_0 : i32, i32, i32
  }
  func.func @transform_1(%arg0: i32) -> (i32, i32) {
    %c0_i32 = arith.constant 0 : i32
    %c0_i32_0 = arith.constant 0 : i32
    return %arg0, %c0_i32 : i32, i32
  }
  func.func @transform_2(%arg0: i32) -> (i32, i32) {
    %c0_i32 = arith.constant 0 : i32
    %c0_i32_0 = arith.constant 0 : i32
    %c0_i32_1 = arith.constant 0 : i32
    return %c0_i32, %c0_i32_0 : i32, i32
  }
  func.func @transform_3(%arg0: i32) -> (i32, i32) {
    %c0_i32 = arith.constant 0 : i32
    %c0_i32_0 = arith.constant 0 : i32
    return %arg0, %c0_i32 : i32, i32
  }
  func.func @transform_4(%arg0: i32) -> (i32, i32) {
    %c0_i32 = arith.constant 0 : i32
    %c0_i32_0 = arith.constant 0 : i32
    return %arg0, %c0_i32 : i32, i32
  }
}

</mosaic_0001>

<bundles_post_ra>
// kernel: tpu_custom_call.1
= control target key start
LH: loop header
LB: loop body
LE: loop exit
PB: predicated region body
PF: predicated region fallthrough
CT: control target
= control target key end

     0   :  { %s1857_s0 = inlined_call_operand.hbm [shape: bf16[16,8,128], index: 0, kind: input, shape index: {}]   ;;  %s1858_s1 = inlined_call_operand.hbm [shape: bf16[16,64], index: 1, kind: input, shape index: {}]   ;;  %s1859_s2 = inlined_call_operand.hbm [shape: bf16[64,128], index: 2, kind: input, shape index: {}]   ;;  %s1860_s3 = inlined_call_operand.hbm [shape: f32[16,128], index: 3, kind: output, shape index: {0}]   ;;  %s1861_s4 = inlined_call_operand.vmem [shape: f32[16,8], index: 4, kind: output, shape index: {1}]  }
   0x1   :  { %1866 = sst [smem:[#allocation13_spill]] %s1857_s0 }
   0x2   :  { %1867 = sst [smem:[#allocation14_spill]] %s1859_s2 }
   0x3   :  { %10 = vsyncpa [#allocation3], 0 }
   0x4   :  { %12 = vsyncpa [#allocation3 + $0x1], 0 }
   0x5   :  { %13 = vsyncpa [#allocation6], 0 }
   0x6   :  { %15 = vsyncpa [#allocation6 + $0x1], 0 }
   0x7   :  { %16 = vsyncpa [#allocation4], 0 }
   0x8   :  { %18 = vsyncpa [#allocation4 + $0x1], 0  ;;  %s1439_s15 = smov 0   ;;  %s1441_s16 = smov 0  }
   0x9   :  { %s1443_s17 = smov 0   ;;  %s1445_s18 = smov 0  }
   0xa LB: > { %s1460_s19 = sadd.s32 4294967295, %s1402_s18   ;;  %s1062_s20 = sadd.s32 4294967294, %s1402_s18   ;;  %s1402_s18 = sphi %s1445_s18, %s1888_s18   ;;  %s1398_s17 = sphi %s1443_s17, %s1887_s17   ;;  %s1394_s16 = sphi %s1441_s16, %s1886_s16   ;;  %s1390_s15 = sphi %s1439_s15, %s1885_s15  }
   0xb   : > { %p44_p0 = scmp.ne.s32.totalorder %s1394_s16, %s1390_s15  ;;  %p1862_p1 = scmp.eq.s32.totalorder %s1460_s19, 0 }
   0xc   : > { %p121_p3 = scmp.eq.s32.totalorder %s1062_s20, 1  ;;  %p1063_p5 = scmp.ge.s32.totalorder %s1402_s18, 1 }
   0xd   : > { %p1469_p4 = por %p1862_p1, %p44_p0  ;;  %p154_p7 = scmp.lt.s32.totalorder %s1402_s18, 3 }
   0xe   : > { %p1474_p6 = por %p121_p3, %p44_p0  ;;  %s1404_s24 = smov [#allocation7]  }
   0xf   : > { %s1868_s21 = scalar_select %p1469_p4, 1, 0 }
  0x10   : > { %s1869_s22 = scalar_select %p1474_p6, 1, 0 }
  0x11   : > { %p1479_p8 = pnand %p1063_p5, %p154_p7  ;;  %s166_s25 = sshll.u32 %s1404_s24, 4  ;;  %s167_s25 = int_to_ptr.vmem [resolvable:$true] %s166_s25 }
  0x12   : > { %s1493_s27 = sadd.s32 1, %s1402_s18   ;;  %s31_s28 = sadd.s32 1, %s1398_s17 }
  0x13   : > { %s1870_s23 = scalar_select %p1479_p8, 1, 0 }
  0x14   : > { %p1152_p9 = pneg %p1479_p8  ;;  %s28_s29 = ssub.s32 %s1402_s18, %s1493_s27 }
  0x15   : > { %s1259_s30 = scalar_lea.vmem %s167_s25, 512  ;;  %p1267_p5 = scmp.lt.s32.totalorder %s167_s25, %s167_s25 }
  0x16   : > { %p1488_p11 = pnand %p1152_p9, %p1862_p1  ;;  %p1260_p13 = scmp.ne.s32.totalorder %s167_s25, %s1259_s30 }
  0x17   : > { %p1268_p7 = scmp.lt.s32.totalorder %s1259_s30, %s1259_s30 }
  0x18   : > { %p1250_p12 = pneg %p1488_p11 }
  0x19   : > { %p1269_p10 = por %p1268_p7, %p1267_p5 }
  0x1a   : > { %p1262_p0 = pnand %p1260_p13, %p1250_p12 }
  0x1c   : > { %p1263_p3 = pneg %p1262_p0 }
  0x1e   : > { %p1270_p2 = pnand %p1269_p10, %p1263_p3 }
  0x20   : > { %1273 = shalt.err (!%p1270_p2)
}
  0x21   : > { %s1405_s5 = smov 64   ;;  %s1406_s6 = smov 4  }
  0x22   : > { %s1872_s2 = sld [smem:[#allocation14_spill]]  ;;  %p29_p2 = scmp.eq.s32.totalorder %s28_s29, 0 }
  0x23   : > { %p38_p9 = scmp.ne.s32.totalorder %s1398_s17, %s1394_s16  ;;  %p39_p10 = scmp.eq.s32.totalorder %s1402_s18, 0 }
  0x24   : > { %p1168_p12 = scmp.lt.s32.totalorder %s1402_s18, 2  ;;  %p1873_p0 = scmp.eq.s32.totalorder %s1460_s19, 1 }
  0x25   : > { %s1513_s9 = scalar_select %p29_p2, %s1398_s17, %s31_s28  }
  0x26   : > { %p40_p13 = por %p39_p10, %p38_p9  ;;  %p1517_p3 = por %p1873_p0, %p38_p9 }
  0x27   : > { %s1522_s11 = sand.u32 1, %s1398_s17   ;;  %s1086_s12 = sshll.u32 %s1402_s18, 9 }
  0x28   : > { %1155 = dma.hbm_to_vmem [thread:$0]  (!%p1488_p11), %s1872_s2, 512, %s167_s25, [#allocation6], %s1405_s5, %s1405_s5, %s1406_s6  }
  0x29   : > { %s1874_s10 = scalar_select %p1517_p3, 1, 0 }
  0x2a   : > { %s1066_s13 = sshll.u32 %s1522_s11, 5  ;;  %s1875_s0 = sld [smem:[#allocation13_spill]] }
  0x2b   : > { %s184_s25 = scalar_lea.vmem [#allocation2], %s1066_s13  ;;  %p1531_p11 = pnand %p1168_p12, %p40_p13 }
  0x2c   : > { %s191_s26 = sshll.u32 %s184_s25, 4  ;;  %s181_s30 = scalar_lea.sflag [#allocation3], %s1522_s11  ;;  %s1535_s26 = int_to_ptr.vmem [resolvable:$true] %s191_s26 }
  0x2d   : > { %p1276_p7 = pneg %p1531_p11 }
  0x30   : > { %s1529_s24 = scalar_lea.hbm %s1875_s0, %s1086_s12  ;;  %s1279_s13 = scalar_lea.hbm %s1875_s0, 1024 }
  0x31   : > { %s1274_s7 = scalar_lea.hbm %s1529_s24, 512  ;;  %p1280_p10 = scmp.lt.s32.totalorder %s1529_s24, %s1875_s0 }
  0x32   : > { %p1275_p5 = scmp.ne.s32.totalorder %s1529_s24, %s1274_s7  ;;  %p1281_p12 = scmp.lt.s32.totalorder %s1279_s13, %s1274_s7 }
  0x34   : > { %p1277_p2 = pnand %p1276_p7, %p1275_p5  ;;  %p1282_p13 = por %p1281_p12, %p1280_p10 }
  0x36   : > { %p1278_p9 = pneg %p1277_p2 }
  0x38   : > { %p1283_p0 = pnand %p1282_p13, %p1278_p9 }
  0x3a   : > { %1286 = shalt.err (!%p1283_p0)
}
  0x3b   : > { %s1287_s25 = scalar_lea.vmem %s1535_s26, 512  ;;  %s1407_s8 = smov [#allocation2]  }
  0x3c   : > { %p1288_p1 = scmp.ne.s32.totalorder %s1535_s26, %s1287_s25  ;;  %s1292_s12 = sshll.u32 %s1407_s8, 4  ;;  %s1293_s12 = int_to_ptr.vmem [resolvable:$false] %s1292_s12 }
  0x3d   : > { %s1294_s29 = scalar_lea.vmem %s1293_s12, 1024  ;;  %p1295_p6 = scmp.lt.s32.totalorder %s1535_s26, %s1293_s12 }
  0x3e   : > { %p1290_p5 = pnand %p1288_p1, %p1276_p7  ;;  %p1296_p3 = scmp.lt.s32.totalorder %s1294_s29, %s1287_s25 }
  0x40   : > { %p1291_p2 = pneg %p1290_p5  ;;  %p1297_p4 = por %p1296_p3, %p1295_p6 }
  0x42   : > { %p1298_p10 = pnand %p1297_p4, %p1291_p2 }
  0x44   : > { %1301 = shalt.err (!%p1298_p10)
}
  0x45   : > { %1159 = dma.hbm_to_vmem [thread:$0]  (!%p1531_p11), %s1529_s24, 512, %s1535_s26, %s181_s30, %s1405_s5, %s1405_s5, %s1406_s6  }
  0x46   : > { %s1069_s7 = sshll.u32 %s1522_s11, 2  ;;  %s1070_s13 = sshll.u32 %s1402_s18, 6 }
  0x47   : > { %s1573_s20 = scalar_lea.hbm %s1858_s1, %s1070_s13  ;;  %s205_s25 = scalar_lea.vmem [#allocation5], %s1069_s7 }
  0x48   : > { %s212_s8 = sshll.u32 %s205_s25, 4  ;;  %s1877_s12 = sand.u32 1, %s1402_s18   ;;  %s213_s8 = int_to_ptr.vmem [resolvable:$true] %s212_s8 }
  0x49   : > { %s202_s0 = scalar_lea.sflag [#allocation6], %s1877_s12  ;;  %s1302_s2 = scalar_lea.hbm %s1573_s20, 64 }
  0x4a   : > { %p1303_p1 = scmp.ne.s32.totalorder %s1573_s20, %s1302_s2  ;;  %s1307_s11 = scalar_lea.hbm %s1858_s1, 128 }
  0x4b   : > { %p1308_p3 = scmp.lt.s32.totalorder %s1573_s20, %s1858_s1  ;;  %p1309_p9 = scmp.lt.s32.totalorder %s1307_s11, %s1302_s2 }
  0x4c   : > { %p1305_p4 = pnand %p1303_p1, %p1276_p7 }
  0x4d   : > { %p1310_p12 = por %p1309_p9, %p1308_p3 }
  0x4e   : > { %p1306_p6 = pneg %p1305_p4 }
  0x50   : > { %p1311_p13 = pnand %p1310_p12, %p1306_p6 }
  0x52   : > { %1314 = shalt.err (!%p1311_p13)
}
  0x53   : > { %s1315_s30 = scalar_lea.vmem %s213_s8, 64  ;;  %s1408_s7 = smov [#allocation5]  }
  0x54   : > { %p1316_p0 = scmp.ne.s32.totalorder %s213_s8, %s1315_s30  ;;  %s1320_s13 = sshll.u32 %s1408_s7, 4  ;;  %s1321_s13 = int_to_ptr.vmem [resolvable:$false] %s1320_s13 }
  0x55   : > { %s1322_s29 = scalar_lea.vmem %s1321_s13, 128  ;;  %p1323_p10 = scmp.lt.s32.totalorder %s213_s8, %s1321_s13 }
  0x56   : > { %p1318_p5 = pnand %p1316_p0, %p1276_p7  ;;  %p1324_p1 = scmp.lt.s32.totalorder %s1322_s29, %s1315_s30 }
  0x58   : > { %p1319_p2 = pneg %p1318_p5  ;;  %p1325_p4 = por %p1324_p1, %p1323_p10 }
  0x5a   : > { %p1326_p8 = pnand %p1325_p4, %p1319_p2 }
  0x5c   : > { %1329 = shalt.err (!%p1326_p8)
}
  0x5d   : > { %1162 = dma.hbm_to_vmem [thread:$0]  (!%p1531_p11), %s1573_s20, 64, %s213_s8, %s202_s0  }
  0x5e   : > { %p1878_p6 = scmp.ne.s32.totalorder %s1870_s23, 0 }
  0x5f   : > { %s1598_s2 = sand.u32 (!%p1878_p6), 1, %s1394_s16   ;;  %p1879_p7 = scmp.ne.s32.totalorder (!%p1878_p6), %s1868_s21, 0 }
  0x60   : > { %221 = sbr.rel (%p1878_p6) target bundleno = 1128 (0x468), region = 32  ;;  %s1072_s14 = sshll.u32 (!%p1878_p6), %s1598_s2, 5 }
  0x61   : > { %s224_s25 = scalar_lea.sflag (!%p1878_p6), [#allocation3], %s1598_s2  ;;  %s1602_s12 = scalar_lea.vmem (!%p1878_p6), [#allocation2], %s1072_s14 }
  0x65   : > { %1373 = dma.done.wait (%p1879_p7), %s224_s25, 512  }
  0x66   : > { %1375 = vsyncadd (%p1879_p7), %s224_s25, 4294966784  ;;  %s232_s0 = sand.u32 1, %s1460_s19   ;;  %s1073_s23 = sshll.u32 %s1598_s2, 2 }
  0x67   : > { %s233_s28 = scalar_lea.sflag [#allocation6], %s232_s0  ;;  %s236_s20 = scalar_lea.vmem [#allocation5], %s1073_s23 }
  0x68   : > { %1377 = dma.done.wait (%p1879_p7), %s233_s28, 64  }
  0x69   : > { %1379 = vsyncadd (%p1879_p7), %s233_s28, 4294967232  ;;  %p1880_p8 = scmp.eq.s32.totalorder %s1460_s19, 0 }
  0x6b   : > { %1381 = dma.done.wait (%p1880_p8), [#allocation6], 512   ;;  %p1881_p11 = pmov %p1880_p8 }
  0x6c   : > { %v1409_v0 = vmov 0.0   ;;  %vm1410_vm0 = vmmov 0   ;;  %v1212_v1 = vld [vmem:[#allocation7 + $0x18] sm:$0xff]   ;;  %v1213_v2 = vld [vmem:[#allocation7 + $0x10] sm:$0xff]   ;;  %v1214_v3 = vld [vmem:[#allocation7 + $0x8] sm:$0xff]   ;;  %vm313_vm1 = vcmask 523264   ;;  %v362_v8 = vlaneseq }
  0x6d   : > { %1383 = vsyncadd (%p1881_p11), [#allocation6], 4294966784  ;;  %1130 = vmatprep.subr.bf16.mxu0 %v1409_v0  ;;  %1138 = vmatprep.mubr.msk.bf16.mxu0 %vm1410_vm0, %v1409_v0  ;;  %v1215_v4 = vld [vmem:[#allocation7] sm:$0xff]   ;;  %v280_v5 = vld [vmem:[%s236_s20] sm:$0xf]  ;;  %vm529_vm2 = vcmask 1041409  }
  0x6e   : > { %1131 = vmatpush3.bf16.msra.mxu0 %v1212_v1  ;;  %v1411_v6 = vmov 1966171168   ;;  %v1618_v10 = vshrl.u32 %v362_v8, 7  ;;  %v1622_v13 = vld [vmem:[%s1602_s12] sm:$0xff]   ;;  %v1628_v17 = vld [vmem:[%s1602_s12 + $0x8] sm:$0xff]   ;;  %v1639_v36 = vld [vmem:[%s1602_s12 + $0x10] sm:$0xff]  }
  0x6f   : > { %1132 = vmatprep.subr.bf16.mxu0 %v1409_v0  ;;  %v360_v7 = vunpack.c.l.s4 %v1411_v6  ;;  %v1089_v22 = vunpack.c.l.bf16 %v1622_v13  ;;  %v1093_v24 = vunpack.c.l.bf16 %v1628_v17  ;;  %v1090_v30 = vunpack.c.h.bf16 %v1622_v13  ;;  %v1650_v45 = vld [vmem:[%s1602_s12 + $0x18] sm:$0xff]   ;;  %p275_p3 = scmp.lt.s32.totalorder %s1460_s19, 1  ;;  %s1075_s24 = sshll.u32 %s1598_s2, 3 }
  0x70   : > { %v1625_v16 = vsub.s32 0, %v1618_v10  ;;  %v1094_v38 = vunpack.c.h.bf16 %v1628_v17  ;;  %v1097_v42 = vunpack.c.l.bf16 %v1639_v36  ;;  %v1098_v47 = vunpack.c.h.bf16 %v1639_v36  ;;  %s1083_s26 = sshll.u32 %s1460_s19, 7  ;;  %s267_s30 = scalar_lea.vmem [#allocation8], %s1075_s24 }
  0x71   : > { %v361_v9 = vunpack.c.0.s8 %v360_v7  ;;  %v1101_v51 = vunpack.c.l.bf16 %v1650_v45  ;;  %v1102_v54 = vunpack.c.h.bf16 %v1650_v45  ;;  %v496_v58 = vand.u32 127, %v362_v8  ;;  %s1785_s21 = scalar_select %p275_p3, %s1460_s19, 1 }
  0x72   : > { %1133 = vmatpush3.bf16.msra.mxu0 %v1213_v2  ;;  %vm531_vm3 = vcmask 1042434   ;;  %vm533_vm4 = vcmask 1043459   ;;  %vm535_vm5 = vcmask 1044484   ;;  %vm537_vm6 = vcmask 1045509   ;;  %s933_s7 = sshll.u32 %s267_s30, 4  ;;  %s1819_s14 = scalar_lea.hbm %s1860_s3, %s1083_s26  ;;  %s934_s7 = int_to_ptr.vmem [resolvable:$true] %s933_s7 }
  0x73   : > { %1134 = vmatprep.subr.bf16.mxu0 %v1409_v0  ;;  %v364_v11 = vsub.s32 %v361_v9, %v1618_v10  ;;  %v1669_v60 = vsub.s32 %v496_v58, %v1618_v10  ;;  %vm539_vm7 = vcmask 1046534   ;;  %vm541_vm8 = vcmask 1047559   ;;  %s1076_s8 = sshll.u32 %s1785_s21, 3  ;;  %s916_s25 = scalar_lea.sflag [#allocation4], %s1598_s2 }
  0x74   : > { %vm544_vm9 = vcmask 64512   ;;  %s278_s11 = scalar_lea.vmem %s1861_s4, %s1076_s8  ;;  %s1330_s19 = scalar_lea.vmem %s934_s7, 128 }
  0x75   : > { %p1331_p9 = scmp.ne.s32.totalorder %s934_s7, %s1330_s19  ;;  %p1882_p12 = scmp.ne.s32.totalorder %s1874_s10, 0 }
  0x76   : > { %1135 = vmatpush3.bf16.msra.mxu0 %v1214_v3  ;;  %s1413_s12 = smov [#allocation8]  }
  0x77   : > { %1136 = vmatprep.subr.bf16.mxu0 %v1409_v0  ;;  %p1332_p13 = pnand %p1331_p9, %p1882_p12  ;;  %s1334_s0 = sshll.u32 %s1413_s12, 4  ;;  %s1335_s0 = int_to_ptr.vmem [resolvable:$false] %s1334_s0 }
  0x78   : > { %s1336_s23 = scalar_lea.vmem %s1335_s0, 256  ;;  %p1337_p5 = scmp.lt.s32.totalorder %s934_s7, %s1335_s0 }
  0x79   : > { %p1333_p0 = pneg %p1332_p13  ;;  %p1338_p2 = scmp.lt.s32.totalorder %s1336_s23, %s1330_s19 }
  0x7a   : > { %1137 = vmatpush3.bf16.msra.mxu0 %v1215_v4 }
  0x7b   : > { %p1339_p10 = por %p1338_p2, %p1337_p5 }
  0x7d   : > { %1139 = vmatmul.mubr.msk.bf16.vlgmr.msra.gmra.mxu0 %vm313_vm1, %v280_v5  ;;  %p1340_p1 = pnand %p1339_p10, %p1333_p0 }
 0x13d   : > { %v351_v12 = vpop.f32.mrf.mxu0 }
 0x13e   : > { %v358_v14 = vcombine.high %v351_v12, %v351_v12  ;;  %v365_v15 = vrot.slane %v351_v12, %v364_v11 }
 0x13f   : > { %v1140_v18 = vpop.f32.mrf.mxu0 }
 0x140   : > { %v372_v19 = vrot.slane %v358_v14, %v364_v11  ;;  %v373_v20 = vcombine.high %v365_v15, %v365_v15  ;;  %v381_v21 = vrot.slane %v365_v15, %v364_v11 }
 0x141   : > { %v354_v23 = vpop.f32.mrf.mxu0 }
 0x142   : > { %v374_v25 = vcombine.high %v372_v19, %v372_v19  ;;  %v426_v26 = vrot.slane %v381_v21, %v1625_v16  ;;  %v403_v27 = vcombine.high %v381_v21, %v381_v21  ;;  %v395_v28 = vrot.slane %v373_v20, %v364_v11 }
 0x143   : > { %v1141_v29 = vpop.f32.mrf.mxu0  ;;  %v388_v31 = vrot.slane %v372_v19, %v364_v11 }
 0x144   : > { %v463_v32 = vmul.f32 %v1089_v22, %v426_v26  ;;  %v434_v33 = vrot.slane %v403_v27, %v1625_v16  ;;  %v430_v34 = vrot.slane %v395_v28, %v1625_v16  ;;  %v405_v35 = vcombine.high %v395_v28, %v395_v28 }
 0x145   : > { %v402_v40 = vrot.slane %v374_v25, %v364_v11  ;;  %v442_v43 = vrot.slane %v388_v31, %v1625_v16  ;;  %v404_v44 = vcombine.high %v388_v31, %v388_v31  ;;  %v1412_v26 = vmov 0  }
 0x146   : > { %471 = vadd.xlane.f32.xlu0 %v463_v32  ;;  %v465_v37 = vmul.f32 %v1093_v24, %v434_v33  ;;  %v438_v39 = vrot.slane %v405_v35, %v1625_v16  ;;  %v464_v41 = vmul.f32 %v1090_v30, %v430_v34  ;;  %1210 = vset.pattern.permute.xlu1 %v1412_v26  ;;  %v555_v27 = vsub.s32 1, %v1618_v10 }
 0x147   : > { %v446_v48 = vrot.slane %v402_v40, %v1625_v16  ;;  %v406_v49 = vcombine.high %v402_v40, %v402_v40  ;;  %v467_v50 = vmul.f32 %v1097_v42, %v442_v43  ;;  %v450_v52 = vrot.slane %v404_v44, %v1625_v16  ;;  %1211 = vset.pattern.permute.xlu0 %v1412_v26 }
 0x148   : > { %475 = vadd.xlane.f32.xlu1 %v465_v37  ;;  %v466_v46 = vmul.f32 %v1094_v38, %v438_v39  ;;  %v559_v28 = vsub.s32 2, %v1618_v10  ;;  %v563_v29 = vsub.s32 3, %v1618_v10  ;;  %v567_v35 = vsub.s32 4, %v1618_v10 }
 0x149   : > { %v468_v53 = vmul.f32 %v1098_v47, %v446_v48  ;;  %v454_v55 = vrot.slane %v406_v49, %v1625_v16  ;;  %v469_v56 = vmul.f32 %v1101_v51, %v450_v52  ;;  %v575_v52 = vsub.s32 6, %v1618_v10 }
 0x14a   : > { %473 = vadd.xlane.f32.xlu0 %v464_v41 }
 0x14b   : > { %v470_v57 = vmul.f32 %v1102_v54, %v454_v55 }
 0x14c   : > { %477 = vadd.xlane.f32.xlu1 %v466_v46  ;;  %v571_v46 = vsub.s32 5, %v1618_v10 }
 0x14e   : > { %479 = vadd.xlane.f32.xlu0 %v467_v50 }
 0x150   : > { %481 = vadd.xlane.f32.xlu1 %v468_v53 }
 0x152   : > { %483 = vadd.xlane.f32.xlu0 %v469_v56 }
 0x154   : > { %485 = vadd.xlane.f32.xlu1 %v470_v57  ;;  %v579_v57 = vsub.s32 7, %v1618_v10 }
 0x1cf   : > { %v472_v59 = vpop.xlane.xlu0 %471 }
 0x1d0   : > { %v500_v63 = vrot.slane %v472_v59, %v1669_v60 }
 0x1d1   : > { %v476_v61 = vpop.xlane.xlu1 %475 }
 0x1d2   : > { %v508_v1 = vrot.slane %v476_v61, %v1669_v60 }
 0x1d3   : > { %v474_v62 = vpop.xlane.xlu0 %473 }
 0x1d4   : > { %v504_v0 = vrot.slane %v474_v62, %v1669_v60 }
 0x1d5   : > { %v478_v2 = vpop.xlane.xlu1 %477 }
 0x1d6   : > { %v530_v3 = vsel %vm529_vm2, %v504_v0, %v500_v63  ;;  %v512_v4 = vrot.slane %v478_v2, %v1669_v60 }
 0x1d7   : > { %v532_v5 = vsel %vm531_vm3, %v508_v1, %v530_v3  ;;  %v480_v6 = vpop.xlane.xlu0 %479 }
 0x1d8   : > { %v534_v7 = vsel %vm533_vm4, %v512_v4, %v532_v5  ;;  %v516_v8 = vrot.slane %v480_v6, %v1669_v60 }
 0x1d9   : > { %v482_v9 = vpop.xlane.xlu1 %481 }
 0x1da   : > { %v536_v11 = vsel %vm535_vm5, %v516_v8, %v534_v7  ;;  %v520_v12 = vrot.slane %v482_v9, %v1669_v60 }
 0x1db   : > { %v484_v14 = vpop.xlane.xlu0 %483 }
 0x1dc   : > { %v524_v15 = vrot.slane %v484_v14, %v1669_v60  ;;  %v538_v18 = vsel %vm537_vm6, %v520_v12, %v536_v11 }
 0x1dd   : > { %v486_v19 = vpop.xlane.xlu1 %485 }
 0x1de   : > { %v528_v20 = vrot.slane %v486_v19, %v1669_v60  ;;  %v540_v21 = vsel %vm539_vm7, %v524_v15, %v538_v18 }
 0x1e0   : > { %v542_v23 = vsel %vm541_vm8, %v528_v20, %v540_v21 }
 0x1e1   : > { %v545_v25 = vsel %vm544_vm9, %v542_v23, -inf }
 0x1e2   : > { %546 = vmax.xlane.f32.xlu0 %v545_v25 }
 0x26b   : > { %v547_v31 = vpop.xlane.xlu0 %546 }
 0x26c   : > { %v552_v32 = vrot.slane %v547_v31, %v1625_v16  ;;  %v556_v33 = vrot.slane %v547_v31, %v555_v27  ;;  %v560_v34 = vrot.slane %v547_v31, %v559_v28  ;;  %v564_v37 = vrot.slane %v547_v31, %v563_v29 }
 0x26d   : > { %v568_v48 = vrot.slane %v547_v31, %v567_v35  ;;  %v572_v53 = vrot.slane %v547_v31, %v571_v46  ;;  %v576_v58 = vrot.slane %v547_v31, %v575_v52 }
 0x26e   : > { %v589_v39 = vsub.f32 %v472_v59, %v552_v32  ;;  %v590_v40 = vsub.f32 %v474_v62, %v556_v33  ;;  %v591_v41 = vsub.f32 %v476_v61, %v560_v34  ;;  %v592_v49 = vsub.f32 %v478_v2, %v564_v37 }
 0x26f   : > { %v593_v55 = vsub.f32 %v480_v6, %v568_v48  ;;  %v594_v59 = vsub.f32 %v482_v9, %v572_v53  ;;  %v580_v62 = vrot.slane %v547_v31, %v579_v57  ;;  %v595_v63 = vsub.f32 %v484_v14, %v576_v58 }
 0x270   : > { %v597_v43 = vmul.f32 1.442695, %v589_v39  ;;  %v599_v44 = vmul.f32 1.442695, %v590_v40  ;;  %v601_v50 = vmul.f32 1.442695, %v591_v41 }
 0x271   : > { %v603_v56 = vmul.f32 1.442695, %v592_v49  ;;  %v605_v61 = vmul.f32 1.442695, %v593_v55  ;;  %v607_v0 = vmul.f32 1.442695, %v594_v59  ;;  %v596_v3 = vsub.f32 %v486_v19, %v580_v62 }
 0x272   : > { %1216 = vpow2.f32 %v597_v43  ;;  %v609_v4 = vmul.f32 1.442695, %v595_v63 }
 0x273   : > { %1218 = vpow2.f32 %v599_v44  ;;  %v611_v6 = vmul.f32 1.442695, %v596_v3 }
 0x274   : > { %1220 = vpow2.f32 %v601_v50 }
 0x275   : > { %1222 = vpow2.f32 %v603_v56 }
 0x276   : > { %1224 = vpow2.f32 %v605_v61 }
 0x277   : > { %1226 = vpow2.f32 %v607_v0 }
 0x278   : > { %1228 = vpow2.f32 %v609_v4 }
 0x279   : > { %1230 = vpow2.f32 %v611_v6 }
 0x27f   : > { %v1217_v1 = vpop.eup %1216 }
 0x280   : > { %v1709_v2 = vpop.eup %1218  ;;  %622 = vperm.xlu1 %1210, %v1217_v1  }
 0x281   : > { %625 = vperm.xlu0 %1211, %v1709_v2   ;;  %v1712_v5 = vpop.eup %1220 }
 0x282   : > { %v1715_v7 = vpop.eup %1222 }
 0x283   : > { %v1718_v8 = vpop.eup %1224 }
 0x284   : > { %628 = vperm.xlu1 %1210, %v1712_v5   ;;  %v1721_v9 = vpop.eup %1226 }
 0x285   : > { %v1724_v11 = vpop.eup %1228 }
 0x286   : > { %v1727_v12 = vpop.eup %1230 }
 0x288   : > { %631 = vperm.xlu1 %1210, %v1715_v7  }
 0x28c   : > { %634 = vperm.xlu1 %1210, %v1718_v8  }
 0x290   : > { %637 = vperm.xlu1 %1210, %v1721_v9  }
 0x294   : > { %640 = vperm.xlu1 %1210, %v1724_v11  }
 0x298   : > { %643 = vperm.xlu1 %1210, %v1727_v12  }
 0x2fb   : > { %v623_v14 = vpop.permute.xlu1 %622 }
 0x2fc   : > { %v626_v20 = vpop.permute.xlu0 %625  ;;  %v648_v25 = vrot.slane %v623_v14, %v1669_v60 }
 0x2fd   : > { %v652_v23 = vrot.slane %v626_v20, %v1669_v60 }
 0x2ff   : > { %v629_v15 = vpop.permute.xlu1 %628  ;;  %v677_v34 = vsel %vm529_vm2, %v652_v23, %v648_v25 }
 0x300   : > { %v656_v26 = vrot.slane %v629_v15, %v1669_v60 }
 0x302   : > { %v678_v39 = vsel %vm531_vm3, %v656_v26, %v677_v34 }
 0x303   : > { %v632_v18 = vpop.permute.xlu1 %631 }
 0x304   : > { %v660_v31 = vrot.slane %v632_v18, %v1669_v60 }
 0x306   : > { %v679_v41 = vsel %vm533_vm4, %v660_v31, %v678_v39 }
 0x307   : > { %v635_v19 = vpop.permute.xlu1 %634 }
 0x308   : > { %v664_v32 = vrot.slane %v635_v19, %v1669_v60 }
 0x30a   : > { %v680_v43 = vsel %vm535_vm5, %v664_v32, %v679_v41 }
 0x30b   : > { %v638_v21 = vpop.permute.xlu1 %637 }
 0x30c   : > { %v668_v37 = vrot.slane %v638_v21, %v1669_v60 }
 0x30e   : > { %v681_v48 = vsel %vm537_vm6, %v668_v37, %v680_v43 }
 0x30f   : > { %v641_v33 = vpop.permute.xlu1 %640 }
 0x310   : > { %v672_v40 = vrot.slane %v641_v33, %v1669_v60 }
 0x312   : > { %v682_v50 = vsel %vm539_vm7, %v672_v40, %v681_v48 }
 0x313   : > { %v644_v44 = vpop.permute.xlu1 %643 }
 0x314   : > { %v676_v49 = vrot.slane %v644_v44, %v1669_v60 }
 0x316   : > { %v683_v53 = vsel %vm541_vm8, %v676_v49, %v682_v50 }
 0x317   : > { %v685_v55 = vsel %vm544_vm9, %v683_v53, 0.0 }
 0x318   : > { %686 = vadd.xlane.f32.xlu1 %v685_v55 }
 0x3a1   : > { %v687_v56 = vpop.xlane.xlu1 %686 }
 0x3a2   : > { %v692_v58 = vrot.slane %v687_v56, %v1625_v16  ;;  %v696_v59 = vrot.slane %v687_v56, %v555_v27  ;;  %v700_v61 = vrot.slane %v687_v56, %v559_v28  ;;  %v704_v62 = vrot.slane %v687_v56, %v563_v29 }
 0x3a3   : > { %v708_v63 = vrot.slane %v687_v56, %v567_v35  ;;  %v712_v16 = vrot.slane %v687_v56, %v571_v46  ;;  %v716_v28 = vrot.slane %v687_v56, %v575_v52  ;;  %v720_v35 = vrot.slane %v687_v56, %v579_v57 }
 0x3a4   : > { %1232 = vrcp.f32 %v692_v58 }
 0x3a5   : > { %1234 = vrcp.f32 %v696_v59 }
 0x3a6   : > { %1236 = vrcp.f32 %v700_v61 }
 0x3a7   : > { %1238 = vrcp.f32 %v704_v62 }
 0x3a8   : > { %1240 = vrcp.f32 %v708_v63 }
 0x3a9   : > { %1242 = vrcp.f32 %v712_v16 }
 0x3aa   : > { %1244 = vrcp.f32 %v716_v28 }
 0x3ab   : > { %1246 = vrcp.f32 %v720_v35 }
 0x3b1   : > { %v1233_v0 = vpop.eup %1232 }
 0x3b2   : > { %v730_v3 = vmul.f32 %v1233_v0, %v1217_v1  ;;  %v1235_v27 = vpop.eup %1234 }
 0x3b3   : > { %v732_v4 = vmul.f32 %v1235_v27, %v1709_v2  ;;  %v1237_v29 = vpop.eup %1236 }
 0x3b4   : > { %754 = vperm.xlu0 %1211, %v730_v3   ;;  %v734_v6 = vmul.f32 %v1237_v29, %v1712_v5  ;;  %v1239_v14 = vpop.eup %1238 }
 0x3b5   : > { %v736_v46 = vmul.f32 %v1239_v14, %v1715_v7  ;;  %v1241_v1 = vpop.eup %1240 }
 0x3b6   : > { %v738_v52 = vmul.f32 %v1241_v1, %v1718_v8  ;;  %v1243_v15 = vpop.eup %1242 }
 0x3b7   : > { %v740_v2 = vmul.f32 %v1243_v15, %v1721_v9  ;;  %v1245_v18 = vpop.eup %1244 }
 0x3b8   : > { %757 = vperm.xlu0 %1211, %v732_v4   ;;  %v742_v10 = vmul.f32 %v1245_v18, %v1724_v11  ;;  %v1247_v57 = vpop.eup %1246 }
 0x3b9   : > { %v744_v5 = vmul.f32 %v1247_v57, %v1727_v12 }
 0x3bc   : > { %760 = vperm.xlu0 %1211, %v734_v6  }
 0x3c0   : > { %763 = vperm.xlu0 %1211, %v736_v46  }
 0x3c4   : > { %766 = vperm.xlu0 %1211, %v738_v52  }
 0x3c8   : > { %769 = vperm.xlu0 %1211, %v740_v2  }
 0x3cc   : > { %772 = vperm.xlu0 %1211, %v742_v10  }
 0x3d0   : > { %775 = vperm.xlu0 %1211, %v744_v5  }
 0x42f   : > { %v755_v19 = vpop.permute.xlu0 %754 }
 0x430   : > { %v842_v9 = vmul.f32 %v1089_v22, %v755_v19 }
 0x432   : > { %v850_v26 = vrot.slane %v842_v9, 4 }
 0x433   : > { %v758_v7 = vpop.permute.xlu0 %757 }
 0x434   : > { %v843_v8 = vmul.f32 %v1090_v30, %v758_v7  ;;  %v851_v37 = vadd.f32 %v850_v26, %v842_v9  ;;  %v784_v13 = vrot.slane %v758_v7, %v1669_v60 }
 0x436   : > { %v856_v11 = vrot.slane %v843_v8, 4  ;;  %v852_v49 = vrot.slane %v851_v37, 2 }
 0x437   : > { %v761_v20 = vpop.permute.xlu0 %760 }
 0x438   : > { %v844_v21 = vmul.f32 %v1093_v24, %v761_v20  ;;  %v857_v30 = vadd.f32 %v856_v11, %v843_v8  ;;  %v788_v43 = vrot.slane %v761_v20, %v1669_v60  ;;  %v853_v28 = vadd.f32 %v852_v49, %v851_v37 }
 0x43a   : > { %v862_v12 = vrot.slane %v844_v21, 4  ;;  %v858_v41 = vrot.slane %v857_v30, 2  ;;  %v854_v5 = vrot.slane %v853_v28, 1 }
 0x43b   : > { %v764_v23 = vpop.permute.xlu0 %763 }
 0x43c   : > { %v845_v25 = vmul.f32 %v1094_v38, %v764_v23  ;;  %v863_v34 = vadd.f32 %v862_v12, %v844_v21  ;;  %v780_v38 = vrot.slane %v755_v19, %v1669_v60  ;;  %v792_v44 = vrot.slane %v764_v23, %v1669_v60 }
 0x43d   : > { %v859_v61 = vadd.f32 %v858_v41, %v857_v30  ;;  %v855_v45 = vadd.f32 %v854_v5, %v853_v28 }
 0x43e   : > { %v868_v31 = vrot.slane %v845_v25, 4  ;;  %v809_v50 = vsel %vm529_vm2, %v784_v13, %v780_v38 }
 0x43f   : > { %v767_v32 = vpop.permute.xlu0 %766  ;;  %v810_v62 = vsel %vm531_vm3, %v788_v43, %v809_v50  ;;  %v860_v1 = vrot.slane %v859_v61, 1 }
 0x440   : > { %v846_v33 = vmul.f32 %v1097_v42, %v767_v32  ;;  %v869_v22 = vadd.f32 %v868_v31, %v845_v25  ;;  %v864_v42 = vrot.slane %v863_v34, 2  ;;  %v796_v55 = vrot.slane %v767_v32, %v1669_v60 }
 0x441   : > { %v811_v16 = vsel %vm533_vm4, %v792_v44, %v810_v62 }
 0x442   : > { %v874_v24 = vrot.slane %v846_v33, 4  ;;  %v870_v53 = vrot.slane %v869_v22, 2  ;;  %v865_v0 = vadd.f32 %v864_v42, %v863_v34  ;;  %v812_v29 = vsel %vm535_vm5, %v796_v55, %v811_v16 }
 0x443   : > { %v770_v39 = vpop.permute.xlu0 %769 }
 0x444   : > { %v875_v40 = vadd.f32 %v874_v24, %v846_v33  ;;  %v847_v17 = vmul.f32 %v1098_v47, %v770_v39  ;;  %v800_v56 = vrot.slane %v770_v39, %v1669_v60  ;;  %v871_v4 = vadd.f32 %v870_v53, %v869_v22 }
 0x445   : > { %v866_v18 = vrot.slane %v865_v0, 1 }
 0x446   : > { %v880_v48 = vrot.slane %v847_v17, 4  ;;  %v876_v47 = vrot.slane %v875_v40, 2  ;;  %v813_v14 = vsel %vm537_vm6, %v800_v56, %v812_v29  ;;  %v872_v19 = vrot.slane %v871_v4, 1 }
 0x447   : > { %v773_v36 = vpop.permute.xlu0 %772  ;;  %v867_v23 = vadd.f32 %v866_v18, %v865_v0 }
 0x448   : > { %v881_v58 = vadd.f32 %v880_v48, %v847_v17  ;;  %v848_v59 = vmul.f32 %v1101_v51, %v773_v36  ;;  %v804_v63 = vrot.slane %v773_v36, %v1669_v60  ;;  %v877_v6 = vadd.f32 %v876_v47, %v875_v40 }
 0x44a   : > { %v882_v3 = vrot.slane %v881_v58, 2  ;;  %v886_v27 = vrot.slane %v848_v59, 4  ;;  %v814_v15 = vsel %vm539_vm7, %v804_v63, %v813_v14  ;;  %v878_v20 = vrot.slane %v877_v6, 1 }
 0x44b   : > { %v776_v35 = vpop.permute.xlu0 %775 }
 0x44c   : > { %v887_v51 = vadd.f32 %v886_v27, %v848_v59  ;;  %v808_v46 = vrot.slane %v776_v35, %v1669_v60  ;;  %v883_v52 = vadd.f32 %v882_v3, %v881_v58  ;;  %v849_v2 = vmul.f32 %v1102_v54, %v776_v35 }
 0x44d   : > { %v861_v60 = vadd.f32 %v860_v1, %v859_v61  ;;  %v873_v54 = vadd.f32 %v872_v19, %v871_v4  ;;  %v879_v12 = vadd.f32 %v878_v20, %v877_v6 }
 0x44e   : > { %v888_v10 = vrot.slane %v887_v51, 2  ;;  %v815_v57 = vsel %vm541_vm8, %v808_v46, %v814_v15  ;;  %v892_v7 = vrot.slane %v849_v2, 4  ;;  %v884_v21 = vrot.slane %v883_v52, 1 }
 0x44f   : > { %817 = vst.msk [vmem:[%s278_s11] sm:$0xff] %vm544_vm9, %v815_v57  ;;  %v906_v26 = vsel %vm529_vm2, %v861_v60, %v855_v45 }
 0x450   : > { %v889_v8 = vadd.f32 %v888_v10, %v887_v51  ;;  %v893_v9 = vadd.f32 %v892_v7, %v849_v2  ;;  %v885_v31 = vadd.f32 %v884_v21, %v883_v52  ;;  %v907_v33 = vsel %vm531_vm3, %v867_v23, %v906_v26 }
 0x451   : > { %v908_v34 = vsel %vm533_vm4, %v873_v54, %v907_v33 }
 0x452   : > { %v890_v11 = vrot.slane %v889_v8, 1  ;;  %v894_v25 = vrot.slane %v893_v9, 2  ;;  %v909_v37 = vsel %vm535_vm5, %v879_v12, %v908_v34 }
 0x453   : > { %v910_v13 = vsel %vm537_vm6, %v885_v31, %v909_v37 }
 0x454   : > { %v895_v32 = vadd.f32 %v894_v25, %v893_v9  ;;  %v891_v30 = vadd.f32 %v890_v11, %v889_v8 }
 0x456   : > { %v896_v24 = vrot.slane %v895_v32, 1  ;;  %v911_v39 = vsel %vm539_vm7, %v891_v30, %v910_v13 }
 0x458   : > { %v897_v22 = vadd.f32 %v896_v24, %v895_v32 }
 0x45a   : > { %v912_v40 = vsel %vm541_vm8, %v897_v22, %v911_v39 }
 0x45b   : > { %914 = vst [vmem:[%s267_s30] sm:$0xff] %v912_v40 }
 0x45c   : > { %1343 = shalt.err (!%p1340_p1)
}
 0x45d   : > { %s1344_s28 = scalar_lea.hbm %s1819_s14, 128  ;;  %s1348_s21 = scalar_lea.hbm %s1860_s3, 256 }
 0x45e   : > { %p1345_p4 = scmp.ne.s32.totalorder %s1819_s14, %s1344_s28  ;;  %p1349_p8 = scmp.lt.s32.totalorder %s1819_s14, %s1860_s3 }
 0x45f   : > { %p1350_p11 = scmp.lt.s32.totalorder %s1348_s21, %s1344_s28 }
 0x460   : > { %p1346_p6 = pnand %p1345_p4, %p1882_p12 }
 0x461   : > { %p1351_p3 = por %p1350_p11, %p1349_p8 }
 0x462   : > { %p1347_p7 = pneg %p1346_p6 }
 0x464   : > { %p1352_p9 = pnand %p1351_p3, %p1347_p7 }
 0x466   : > { %1355 = shalt.err (!%p1352_p9)
}
 0x467   : > { %1150 = dma.vmem_to_hbm [thread:$0]  (%p1882_p12), %s934_s7, 128, %s1819_s14, %s916_s25  }
 0x468 PF: > { %s948_s6 = sand.u32 1, %s1390_s15   ;;  %p1883_p13 = scmp.ne.s32.totalorder %s1869_s22, 0 }
 0x469   : > { %p1884_p0 = scmp.ge.s32.totalorder %s1402_s18, 2  ;;  %s949_s11 = scalar_lea.sflag [#allocation4], %s948_s6 }
 0x46b   : > { %p1164_p5 = pnand %p1884_p0, %p1883_p13 }
 0x46d   : > { %p1165_p2 = pneg %p1164_p5 }
 0x46f   : > { %1385 = dma.done.wait (%p1165_p2), %s949_s11, 128  }
 0x470   : > { %1387 = vsyncadd (%p1165_p2), %s949_s11, 4294967168  ;;  %p21_p10 = scmp.ge.s32.totalorder %s1493_s27, 4   ;;  %s1885_s15 = smov %s1394_s16 }
 0x471   : > { %s1886_s16 = smov %s1398_s17  ;;  %s1887_s17 = smov %s1513_s9 }
 0x472   : > { %s1888_s18 = smov %s1493_s27  ;;  %23 = sbr.rel (!%p21_p10) target bundleno = 10 (0xa), region = 106 }
 0x477   :  { %961 = vsyncpa [#allocation3], 1 }
 0x478   :  { %963 = vsyncpa [#allocation3 + $0x1], 1 }
 0x479   :  { %964 = vsyncpa [#allocation6], 1 }
 0x47a   :  { %966 = vsyncpa [#allocation6 + $0x1], 1 }
 0x47b   :  { %967 = vsyncpa [#allocation4], 1 }
 0x47c   :  { %969 = vsyncpa [#allocation4 + $0x1], 1 }

</bundles_post_ra>
